<compile_context>
chip_gen: v7x
topology: tpu7x:2x2x1
jax: 0.10.0
libtpu: 0.0.40
codegen_flags: <defaults>
</compile_context>

<pallas_src>
import jax
import jax.numpy as jnp
from jax.experimental import pallas as pl
from jax.experimental.pallas import tpu as pltpu


_VMEM_WORK_BUDGET = 28 * 1024 * 1024   # per-step working-set target (fits v7x's 64 MiB)
_VMEM_LIMIT_CAP = 48 * 1024 * 1024     # never request more scoped VMEM than this
_FOLDED_BLOCK_ROWS = 2048              # folded tiles move ~1 MiB of x per grid step


def _round_up(n, m):
    return ((n + m - 1) // m) * m


def _cdiv(a, b):
    return (a + b - 1) // b


def _balanced_row_tiles(n_rows, target_rows, granule):
    """Balanced row tiling: padding waste < granule rows per tile, and >=2 tiles
    whenever there are >= 2 granules of work (keeps v7x's 2nd TensorCore busy)."""
    min_tiles = 2 if n_rows >= 2 * granule else 1
    n_tiles = max(min_tiles, _cdiv(n_rows, target_rows))
    bm = _round_up(_cdiv(n_rows, n_tiles), granule)
    n_tiles = _cdiv(n_rows, bm)
    return bm, n_tiles, n_tiles * bm


def _linear_kernel(x_ref, w_ref, b_ref, o_ref):
    """One (bm, N) output tile of y = x @ w + b, accumulated over the K grid axis.

    x_ref: VMEM (bm, tk)  streamed batch tile
    w_ref: VMEM (tk, N)   weight tile, already oriented (K, N) -> no per-step transpose
    b_ref: VMEM (1,  N)   bias row (resident, constant index_map)
    o_ref: VMEM (bm, N)   f32 output tile, resident across the K axis (accumulator)
    """
    k = pl.program_id(1)

    @pl.when(k == 0)
    def _():
        o_ref[...] = jnp.zeros_like(o_ref)

    o_ref[...] += jnp.dot(x_ref[...], w_ref[...], preferred_element_type=jnp.float32)

    @pl.when(k == pl.num_programs(1) - 1)
    def _():
        o_ref[...] += b_ref[...]          # (1, N) broadcasts over the rows


def _pallas_linear(x, w, b_row, *, block_rows, compute_dtype=None):
    """y = x @ w + b_row with a row-tiled (and K-tiled when needed) Pallas kernel.

    x:     (B, K)
    w:     (K, N)   with N a multiple of 128 (lane-dense output stores)
    b_row: (1, N)   float32
    Returns (B, N) float32.
    """
    B, K = x.shape
    Kw, N = w.shape
    assert K == Kw and N % 128 == 0 and b_row.shape == (1, N)

    if compute_dtype is not None:
        x = x.astype(compute_dtype)
        w = w.astype(compute_dtype)
    b_row = b_row.astype(jnp.float32)

    itx = x.dtype.itemsize
    itw = w.dtype.itemsize
    granule = 8 if itx >= 4 else (16 if itx == 2 else 32)   # sublane packing

    bm, n_m, Bp = _balanced_row_tiles(B, block_rows, granule)
    tk = K if K <= 2048 else 1024

    def working_set(bm_, tk_):
        # double-buffered x / w / out tiles + the bias row
        return (2 * bm_ * tk_ * itx + 2 * tk_ * N * itw
                + 2 * bm_ * N * 4 + 2 * N * 4)

    # Shrink the batch tile, then the K tile, until the working set fits VMEM
    # (matters on v7x with 64 MiB physical and v5e's 16 MiB default scope).
    while working_set(bm, tk) > _VMEM_WORK_BUDGET and bm > granule:
        bm = max(granule, _round_up(bm // 2, granule))
    while working_set(bm, tk) > _VMEM_WORK_BUDGET and tk > 128:
        tk = max(128, _round_up(tk // 2, 128))
    # TODO(synk): add an N (d_out) grid axis for extremely wide output layers.

    n_m = _cdiv(B, bm)
    Bp = n_m * bm
    if tk >= K:
        Kp = _round_up(K, 8)          # keep the contraction dim sublane-aligned
        tk, nk = Kp, 1
    else:
        Kp = _round_up(K, tk)
        nk = Kp // tk

    if Bp != B or Kp != K:
        x = jnp.pad(x, ((0, Bp - B), (0, Kp - K)))
    if Kp != K:
        w = jnp.pad(w, ((0, Kp - K), (0, 0)))

    est = working_set(bm, tk)
    vmem_limit = int(min(_VMEM_LIMIT_CAP, max(16 << 20, 2 * est)))

    # NOTE: weight/bias index_maps are constant, so their tiles are fetched once
    # and stay resident; pipeline_mode=pl.Buffered(1) could drop their second
    # buffer for extra headroom on very wide layers.
    out = pl.pallas_call(
        _linear_kernel,
        out_shape=jax.ShapeDtypeStruct((Bp, N), jnp.float32),
        grid_spec=pltpu.PrefetchScalarGridSpec(
            num_scalar_prefetch=0,
            grid=(n_m, nk),
            in_specs=[
                pl.BlockSpec((bm, tk), lambda m, k: (m, k)),   # streamed batch tile
                pl.BlockSpec((tk, N), lambda m, k: (k, 0)),    # weight (resident over m)
                pl.BlockSpec((1, N), lambda m, k: (0, 0)),     # bias (resident)
            ],
            out_specs=pl.BlockSpec((bm, N), lambda m, k: (m, 0)),
        ),
        compiler_params=pltpu.CompilerParams(
            dimension_semantics=("parallel", "arbitrary"),
            vmem_limit_bytes=vmem_limit,
        ),
    )(x, w, b_row)
    return out[:B]


def logistic_regression_forward(x, weight, bias, *, block_m=512, compute_dtype=None):
    """Forward pass of Logistic_Regression: output = x @ weight.T + bias.

    x:      [B, d_in]      float32
    weight: [d_out, d_in]  (PyTorch nn.Linear layout)
    bias:   [d_out]
    compute_dtype: optional MXU input dtype (e.g. jnp.bfloat16); accumulation
                   and outputs stay float32.
    Returns [B, d_out] float32.
    """
    B, d_in = x.shape
    d_out, d_in_w = weight.shape
    assert d_in == d_in_w, "weight/input feature mismatch"

    if d_in == d_out and d_in < 128 and 128 % d_in == 0:
        # Lane-folded tiny-head path (the module's 2-feature / 2-class case).
        # x [B, d] is viewed as [B/fold, 128] (free row-major reshape) and the
        # dxd linear becomes a lane-dense matmul against kron(I_fold, W^T);
        # the bias tiles across the 128 lanes.
        fold = 128 // d_in
        Bs = _round_up(B, fold)
        xp = jnp.pad(x, ((0, Bs - B), (0, 0))) if Bs != B else x
        x_f = xp.reshape(Bs // fold, 128)
        w_f = jnp.kron(jnp.eye(fold, dtype=weight.dtype), weight.T)     # (128, 128)
        b_f = jnp.tile(bias.astype(jnp.float32), fold).reshape(1, 128)
        out_f = _pallas_linear(x_f, w_f, b_f,
                               block_rows=_FOLDED_BLOCK_ROWS,
                               compute_dtype=compute_dtype)
        return out_f.reshape(-1, d_out)[:B]

    # General path: weight fed as (d_in, d_out_pad) (one wrapper-side transpose
    # amortized over every batch tile), d_out zero-padded to a multiple of 128
    # so output stores are full-width unmasked vst.
    n_pad = _round_up(d_out, 128)
    w_kn = jnp.zeros((d_in, n_pad), weight.dtype).at[:, :d_out].set(weight.T)
    b_row = jnp.zeros((1, n_pad), jnp.float32).at[0, :d_out].set(bias.astype(jnp.float32))
    out = _pallas_linear(x, w_kn, b_row, block_rows=block_m,
                         compute_dtype=compute_dtype)
    return out[:, :d_out]


if __name__ == "__main__":
    # Module semantics: input_dim = 2 features (long, lat), output_dim = 2 classes.
    batch, input_dim, output_dim = 8, 2, 2
    key = jax.random.PRNGKey(0)
    kx, kw, kb = jax.random.split(key, 3)
    x = jax.random.normal(kx, (batch, input_dim), dtype=jnp.float32)
    # Deterministic init mimicking nn.Linear's uniform(-1/sqrt(fan_in), 1/sqrt(fan_in)).
    bound = 1.0 / (input_dim ** 0.5)
    weight = jax.random.uniform(kw, (output_dim, input_dim), jnp.float32, -bound, bound)
    bias = jax.random.uniform(kb, (output_dim,), jnp.float32, -bound, bound)

    out = logistic_regression_forward(x, weight, bias)
    jax.block_until_ready(out)
    ref = x @ weight.T + bias
    assert out.shape == (batch, output_dim)
    assert jnp.allclose(out, ref, atol=1e-5, rtol=1e-5), "mismatch (lane-folded, B=8)"

    # Lane-folded path with a batch that is not a multiple of 64 and spans 2 tiles.
    xb = jax.random.normal(jax.random.PRNGKey(2), (1000, input_dim), dtype=jnp.float32)
    outb = logistic_regression_forward(xb, weight, bias)
    jax.block_until_ready(outb)
    refb = xb @ weight.T + bias
    assert outb.shape == (1000, output_dim)
    assert jnp.allclose(outb, refb, atol=1e-5, rtol=1e-5), "mismatch (lane-folded, B=1000)"

    # General (MXU) path: d_out < 128 exercises lane-dense output padding,
    # B=300 exercises balanced (non-divisible) batch tiling.
    B2, D2_in, D2_out = 300, 64, 16
    k2x, k2w, k2b = jax.random.split(jax.random.PRNGKey(1), 3)
    x2 = jax.random.normal(k2x, (B2, D2_in), dtype=jnp.float32)
    w2 = jax.random.normal(k2w, (D2_out, D2_in), dtype=jnp.float32) * 0.1
    b2 = jax.random.normal(k2b, (D2_out,), dtype=jnp.float32)
    out2 = logistic_regression_forward(x2, w2, b2, block_m=128)
    jax.block_until_ready(out2)
    ref2 = x2 @ w2.T + b2
    assert out2.shape == (B2, D2_out)
    assert jnp.allclose(out2, ref2, atol=1e-4, rtol=1e-4), "mismatch (MXU path, f32)"

    # bf16-input variant of the MXU path (f32 accumulation / f32 outputs).
    out2_bf = logistic_regression_forward(x2, w2, b2, block_m=128,
                                          compute_dtype=jnp.bfloat16)
    jax.block_until_ready(out2_bf)
    ref2_bf = (x2.astype(jnp.bfloat16).astype(jnp.float32)
               @ w2.astype(jnp.bfloat16).astype(jnp.float32).T + b2)
    assert jnp.allclose(out2_bf, ref2_bf, atol=2e-2, rtol=2e-2), "mismatch (MXU path, bf16)"

    print("KERNEL_OK")
</pallas_src>

<mosaic_0001>
module attributes {stable_mosaic.version = 11 : i64} {
  func.func @_linear_kernel(%arg0: i32, %arg1: i32, %arg2: memref<8x128xf32, #tpu.memory_space<vmem>>, %arg3: memref<128x128xf32, #tpu.memory_space<vmem>>, %arg4: memref<1x128xf32, #tpu.memory_space<vmem>>, %arg5: memref<8x128xf32, #tpu.memory_space<vmem>>) attributes {dimension_semantics = [#tpu.dimension_semantics<parallel>, #tpu.dimension_semantics<arbitrary>], iteration_bounds = array<i64: 1, 1>, scalar_prefetch = 0 : i64, scratch_operands = 0 : i64, tpu.core_type = #tpu.core_type<tc>, window_params = [{transform_indices = @transform_0, window_bounds = array<i64: 8, 128>}, {transform_indices = @transform_1, window_bounds = array<i64: 128, 128>}, {pipeline_mode = #tpu.pipeline_mode<synchronous>, transform_indices = @transform_2, window_bounds = array<i64: 1, 128>}, {transform_indices = @transform_3, window_bounds = array<i64: 8, 128>}]} {
    %c0_i32 = arith.constant 0 : i32
    %0 = arith.cmpi eq, %arg1, %c0_i32 : i32
    %1 = arith.extui %0 : i1 to i32
    %c0_i32_0 = arith.constant 0 : i32
    %2 = arith.cmpi ne, %1, %c0_i32_0 : i32
    scf.if %2 {
      %cst_10 = arith.constant 0.000000e+00 : f32
      %12 = vector.broadcast %cst_10 : f32 to vector<8x128xf32>
      %c0_11 = arith.constant 0 : index
      %c0_12 = arith.constant 0 : index
      %13 = vector.load %arg5[%c0_11, %c0_12] : memref<8x128xf32, #tpu.memory_space<vmem>>, vector<8x128xf32>
      tpu.vector_store %arg5[%c0_11, %c0_12], %12 {strides = array<i32>} : memref<8x128xf32, #tpu.memory_space<vmem>>, vector<8x128xf32>,
    } else {
    }
    %c0 = arith.constant 0 : index
    %c0_1 = arith.constant 0 : index
    %3 = vector.load %arg5[%c0, %c0_1] : memref<8x128xf32, #tpu.memory_space<vmem>>, vector<8x128xf32>
    %c0_2 = arith.constant 0 : index
    %c0_3 = arith.constant 0 : index
    %4 = vector.load %arg2[%c0_2, %c0_3] : memref<8x128xf32, #tpu.memory_space<vmem>>, vector<8x128xf32>
    %c0_4 = arith.constant 0 : index
    %c0_5 = arith.constant 0 : index
    %5 = vector.load %arg3[%c0_4, %c0_5] : memref<128x128xf32, #tpu.memory_space<vmem>>, vector<128x128xf32>
    %cst = arith.constant dense<0.000000e+00> : vector<8x128xf32>
    %6 = tpu.matmul %4, %5, %cst {dimension_numbers = #tpu.dot_dimension_numbers<[1], [0], [0], [1], [0, 0, 1, 1], [], []>} : vector<8x128xf32>, vector<128x128xf32>, vector<8x128xf32> -> vector<8x128xf32>
    %7 = arith.addf %3, %6 : vector<8x128xf32>
    %c0_6 = arith.constant 0 : index
    %c0_7 = arith.constant 0 : index
    %8 = vector.load %arg5[%c0_6, %c0_7] : memref<8x128xf32, #tpu.memory_space<vmem>>, vector<8x128xf32>
    tpu.vector_store %arg5[%c0_6, %c0_7], %7 {strides = array<i32>} : memref<8x128xf32, #tpu.memory_space<vmem>>, vector<8x128xf32>,
    %c0_i32_8 = arith.constant 0 : i32
    %9 = arith.cmpi eq, %arg1, %c0_i32_8 : i32
    %10 = arith.extui %9 : i1 to i32
    %c0_i32_9 = arith.constant 0 : i32
    %11 = arith.cmpi ne, %10, %c0_i32_9 : i32
    scf.if %11 {
      %c0_10 = arith.constant 0 : index
      %c0_11 = arith.constant 0 : index
      %12 = vector.load %arg5[%c0_10, %c0_11] : memref<8x128xf32, #tpu.memory_space<vmem>>, vector<8x128xf32>
      %c0_12 = arith.constant 0 : index
      %c0_13 = arith.constant 0 : index
      %13 = vector.load %arg4[%c0_12, %c0_13] : memref<1x128xf32, #tpu.memory_space<vmem>>, vector<1x128xf32>
      %14 = vector.broadcast %13 : vector<1x128xf32> to vector<8x128xf32>
      %15 = arith.addf %12, %14 : vector<8x128xf32>
      %c0_14 = arith.constant 0 : index
      %c0_15 = arith.constant 0 : index
      %16 = vector.load %arg5[%c0_14, %c0_15] : memref<8x128xf32, #tpu.memory_space<vmem>>, vector<8x128xf32>
      tpu.vector_store %arg5[%c0_14, %c0_15], %15 {strides = array<i32>} : memref<8x128xf32, #tpu.memory_space<vmem>>, vector<8x128xf32>,
    } else {
    }
    return
  }
  func.func @transform_0(%arg0: i32, %arg1: i32) -> (i32, i32) {
    %c0_i32 = arith.constant 0 : i32
    return %arg0, %arg1 : i32, i32
  }
  func.func @transform_1(%arg0: i32, %arg1: i32) -> (i32, i32) {
    %c0_i32 = arith.constant 0 : i32
    %c0_i32_0 = arith.constant 0 : i32
    return %arg1, %c0_i32 : i32, i32
  }
  func.func @transform_2(%arg0: i32, %arg1: i32) -> (i32, i32) {
    %c0_i32 = arith.constant 0 : i32
    %c0_i32_0 = arith.constant 0 : i32
    %c0_i32_1 = arith.constant 0 : i32
    return %c0_i32, %c0_i32_0 : i32, i32
  }
  func.func @transform_3(%arg0: i32, %arg1: i32) -> (i32, i32) {
    %c0_i32 = arith.constant 0 : i32
    %c0_i32_0 = arith.constant 0 : i32
    return %arg0, %c0_i32 : i32, i32
  }
}

</mosaic_0001>

<bundles_post_ra>
// kernel: tpu_custom_call.1
= control target key start
LH: loop header
LB: loop body
LE: loop exit
PB: predicated region body
PF: predicated region fallthrough
CT: control target
= control target key end

     0   :  { %8 = vsyncpa [#allocation3], 0  ;;  %s396_s0 = inlined_call_operand.hbm [shape: f32[8,128], index: 0, kind: input, shape index: {}]   ;;  %s397_s1 = inlined_call_operand.hbm [shape: f32[128,128], index: 1, kind: input, shape index: {}]   ;;  %s398_s2 = inlined_call_operand.vmem [shape: f32[1,128], index: 2, kind: input, shape index: {}]   ;;  %s399_s3 = inlined_call_operand.hbm [shape: f32[8,128], index: 3, kind: output, shape index: {}]  }
   0x1   :  { %9 = vsyncpa [#allocation6], 0 }
   0x2   :  { %10 = vsyncpa [#allocation4], 0  ;;  %s322_s12 = smov [#allocation2]   ;;  %s323_s14 = smov [#allocation5]  }
   0x3   :  { %s17_s13 = sshll.u32 %s322_s12, 4  ;;  %s26_s15 = sshll.u32 %s323_s14, 4  ;;  %s18_s13 = int_to_ptr.vmem [resolvable:$true] %s17_s13  ;;  %s350_s15 = int_to_ptr.vmem [resolvable:$true] %s26_s15 }
   0x4   :  { %s250_s18 = scalar_lea.hbm %s396_s0, 128 }
   0x5   :  { %p251_p0 = scmp.ne.s32.totalorder %s396_s0, %s250_s18  ;;  %p254_p1 = scmp.lt.u32.totalorder %s250_s18, %s396_s0 }
   0x7   :  { %p256_p2 = pnand %p254_p1, %p251_p0 }
   0x9   :  { %259 = shalt.err (!%p256_p2)
}
   0xa   :  { %s260_s23 = scalar_lea.vmem %s18_s13, 128  ;;  %p265_p4 = scmp.lt.s32.totalorder %s18_s13, %s18_s13 }
   0xb   :  { %p261_p3 = scmp.ne.s32.totalorder %s18_s13, %s260_s23  ;;  %p266_p5 = scmp.lt.s32.totalorder %s260_s23, %s260_s23 }
   0xd   :  { %p267_p6 = por %p266_p5, %p265_p4 }
   0xf   :  { %p268_p7 = pnand %p267_p6, %p261_p3 }
  0x11   :  { %271 = shalt.err (!%p268_p7)
}
  0x12   :  { %20 = dma.hbm_to_vmem [thread:$0]  %s396_s0, 128, %s18_s13, [#allocation3]  }
  0x13   :  { %s272_s28 = scalar_lea.hbm %s397_s1, 2048 }
  0x14   :  { %p273_p8 = scmp.ne.s32.totalorder %s397_s1, %s272_s28  ;;  %p276_p9 = scmp.lt.u32.totalorder %s272_s28, %s397_s1 }
  0x16   :  { %p278_p10 = pnand %p276_p9, %p273_p8 }
  0x18   :  { %281 = shalt.err (!%p278_p10)
}
  0x19   :  { %s282_s6 = scalar_lea.vmem %s350_s15, 2048  ;;  %p287_p12 = scmp.lt.s32.totalorder %s350_s15, %s350_s15 }
  0x1a   :  { %p283_p11 = scmp.ne.s32.totalorder %s350_s15, %s282_s6  ;;  %p288_p13 = scmp.lt.s32.totalorder %s282_s6, %s282_s6 }
  0x1c   :  { %p289_p0 = por %p288_p13, %p287_p12 }
  0x1e   :  { %p290_p1 = pnand %p289_p0, %p283_p11 }
  0x20   :  { %293 = shalt.err (!%p290_p1)
}
  0x21   :  { %s324_s0 = smov 128   ;;  %s325_s7 = smov 8  }
  0x22   :  { %32 = dma.hbm_to_vmem [thread:$0]  %s397_s1, 2048, %s350_s15, [#allocation6], %s324_s0, %s324_s0, %s325_s7  }
  0x23   :  { %316 = dma.done.wait [#allocation3], 128  }
  0x24   :  { %317 = vsyncadd [#allocation3], 4294967168 }
  0x25   :  { %318 = dma.done.wait [#allocation6], 2048  }
  0x26   :  { %319 = vsyncadd [#allocation6], 4294965248  ;;  %v326_v0 = vmov 0.0|0.0   ;;  %vm327_vm0 = vmmov 0   ;;  %v328_v1 = vmov 0.0   ;;  %v48_v2 = vld [vmem:[#allocation5] sm:$0xff] }
  0x27   :  { %218 = vmatprep.subr.bf16.mxu0 %v326_v0  ;;  %215 = vmatprep.mubr.msk.f32.mxu0 %vm327_vm0, %v328_v1  ;;  %v49_v3 = vld [vmem:[#allocation5 + $0x8] sm:$0xff]  ;;  %v50_v4 = vld [vmem:[#allocation5 + $0x10] sm:$0xff]  ;;  %v51_v6 = vld [vmem:[#allocation5 + $0x18] sm:$0xff]  ;;  %s329_s11 = smov [#allocation7]  }
  0x28   :  { %v219_v5 = vpack.c.bf16 %v49_v3, %v48_v2  ;;  %v222_v7 = vpack.c.bf16 %v51_v6, %v50_v4  ;;  %v52_v8 = vld [vmem:[#allocation5 + $0x20] sm:$0xff]  ;;  %v53_v9 = vld [vmem:[#allocation5 + $0x28] sm:$0xff]  ;;  %v54_v11 = vld [vmem:[#allocation5 + $0x30] sm:$0xff]  ;;  %s155_s12 = sshll.u32 %s329_s11, 4  ;;  %s156_s12 = int_to_ptr.vmem [resolvable:$true] %s155_s12 }
  0x29   :  { %v225_v10 = vpack.c.bf16 %v53_v9, %v52_v8  ;;  %v55_v12 = vld [vmem:[#allocation5 + $0x38] sm:$0xff]  ;;  %v56_v14 = vld [vmem:[#allocation5 + $0x40] sm:$0xff]  ;;  %v57_v15 = vld [vmem:[#allocation5 + $0x48] sm:$0xff]  ;;  %s294_s13 = scalar_lea.vmem %s156_s12, 128  ;;  %p299_p3 = scmp.lt.s32.totalorder %s156_s12, %s156_s12 }
  0x2a   :  { %220 = vmatpush3.bf16.msra.mxu0 %v219_v5  ;;  %v228_v13 = vpack.c.bf16 %v55_v12, %v54_v11  ;;  %v231_v16 = vpack.c.bf16 %v57_v15, %v56_v14  ;;  %v58_v17 = vld [vmem:[#allocation5 + $0x50] sm:$0xff]  ;;  %v59_v18 = vld [vmem:[#allocation5 + $0x58] sm:$0xff]  ;;  %v60_v20 = vld [vmem:[#allocation5 + $0x60] sm:$0xff]  ;;  %p295_p2 = scmp.ne.s32.totalorder %s156_s12, %s294_s13  ;;  %p300_p4 = scmp.lt.s32.totalorder %s294_s13, %s294_s13 }
  0x2b   :  { %221 = vmatprep.subr.bf16.mxu0 %v326_v0  ;;  %v234_v19 = vpack.c.bf16 %v59_v18, %v58_v17  ;;  %v61_v21 = vld [vmem:[#allocation5 + $0x68] sm:$0xff]  ;;  %v62_v23 = vld [vmem:[#allocation5 + $0x70] sm:$0xff]  ;;  %v63_v24 = vld [vmem:[#allocation5 + $0x78] sm:$0xff] }
  0x2c   :  { %v237_v22 = vpack.c.bf16 %v61_v21, %v60_v20  ;;  %v240_v25 = vpack.c.bf16 %v63_v24, %v62_v23  ;;  %v47_v26 = vld [vmem:[#allocation2] sm:$0xff]  ;;  %p301_p5 = por %p300_p4, %p299_p3 }
  0x2d   :  { %v165_v28 = vld [vmem:[%s398_s2] ss:$0 sm:$0xff] }
  0x2e   :  { %223 = vmatpush3.bf16.msra.mxu0 %v222_v7  ;;  %p302_p6 = pnand %p301_p5, %p295_p2 }
  0x2f   :  { %224 = vmatprep.subr.bf16.mxu0 %v326_v0 }
  0x32   :  { %226 = vmatpush3.bf16.msra.mxu0 %v225_v10 }
  0x33   :  { %227 = vmatprep.subr.bf16.mxu0 %v326_v0 }
  0x36   :  { %229 = vmatpush3.bf16.msra.mxu0 %v228_v13 }
  0x37   :  { %230 = vmatprep.subr.bf16.mxu0 %v326_v0 }
  0x3a   :  { %232 = vmatpush3.bf16.msra.mxu0 %v231_v16 }
  0x3b   :  { %233 = vmatprep.subr.bf16.mxu0 %v326_v0 }
  0x3e   :  { %235 = vmatpush3.bf16.msra.mxu0 %v234_v19 }
  0x3f   :  { %236 = vmatprep.subr.bf16.mxu0 %v326_v0 }
  0x42   :  { %238 = vmatpush3.bf16.msra.mxu0 %v237_v22 }
  0x43   :  { %239 = vmatprep.subr.bf16.mxu0 %v326_v0 }
  0x46   :  { %241 = vmatpush3.bf16.msra.mxu0 %v240_v25 }
  0x49   :  { %216 = vmatmul.mubr.f32.vlgmr.msra.gmra.mrb[0].mxu0 %v47_v26 }
 0x11c   :  { %v130_v27 = vpop.f32.mrb[0].mxu0 }
 0x11d   :  { %v217_v29 = vpop.f32.mrb[1].mxu0  ;;  %v147_v30 = vadd.f32 %v165_v28, %v130_v27 }
 0x11f   :  { %148 = vst [vmem:[#allocation7] sm:$0xff] %v147_v30 }
 0x120   :  { %305 = shalt.err (!%p302_p6)
}
 0x121   :  { %s306_s16 = scalar_lea.hbm %s399_s3, 128 }
 0x122   :  { %p307_p7 = scmp.ne.s32.totalorder %s399_s3, %s306_s16  ;;  %p310_p8 = scmp.lt.u32.totalorder %s306_s16, %s399_s3 }
 0x124   :  { %p312_p9 = pnand %p310_p8, %p307_p7 }
 0x126   :  { %315 = shalt.err (!%p312_p9)
}
 0x127   :  { %158 = dma.vmem_to_hbm [thread:$0]  %s156_s12, 128, %s399_s3, [#allocation4]  }
 0x128   :  { %320 = dma.done.wait [#allocation4], 128  }
 0x129   :  { %321 = vsyncadd [#allocation4], 4294967168 }
 0x12a   :  { %162 = vsyncpa [#allocation3], 1 }
 0x12b   :  { %163 = vsyncpa [#allocation6], 1 }
 0x12c   :  { %164 = vsyncpa [#allocation4], 1 }

</bundles_post_ra>
